<compile_context>
chip_gen: v7x
topology: tpu7x:2x2x1
jax: 0.10.0
libtpu: 0.0.40
codegen_flags: <defaults>
</compile_context>

<pallas_src>
import math

import jax
import jax.numpy as jnp
from jax import lax
from jax.experimental import pallas as pl
from jax.experimental.pallas import tpu as pltpu


# --------------------------------------------------------------------------
# helpers
# --------------------------------------------------------------------------
def _prod(xs):
    return int(math.prod(xs)) if xs else 1


def _round_up(a, b):
    return -(-int(a) // int(b)) * int(b)


def _vmem_budget():
    """(working-set budget, scoped vmem limit) in bytes, per generation."""
    cap = 128 * 1024 * 1024
    try:
        info = pltpu.get_tpu_info()
        cap_attr = getattr(info, "vmem_capacity_bytes", None)
        if cap_attr:
            cap = int(cap_attr)
    except Exception:
        pass
    budget = cap // 4                      # incl. double-buffered blocks
    limit = min((cap * 3) // 4, budget + (16 << 20))
    return budget, limit


def _fit_tile(full, gran, max_elems):
    """Largest legal tile: either the full dim, or a multiple of `gran`."""
    full, gran, max_elems = int(full), max(1, int(gran)), int(max_elems)
    if full <= max_elems or full <= gran:
        return full
    return max(gran, (max_elems // gran) * gran)


def _key_info(dtype):
    """(key dtype, is_float, sentinel) for order-preserving comparisons."""
    dt = jnp.dtype(dtype)
    if jnp.issubdtype(dt, jnp.floating):
        return jnp.dtype(jnp.float32), True, float("-inf")
    if dt == jnp.dtype(jnp.bool_) or dt.itemsize < 4:
        kdt = jnp.dtype(jnp.int32)
    else:
        kdt = dt
    return kdt, False, int(jnp.iinfo(kdt).min)


def _make_key(x, kdt, is_float):
    x = x.astype(kdt)
    if is_float:
        # NaN behaves as the maximum (torch/numpy argmax semantics).
        x = jnp.where(jnp.isnan(x), jnp.asarray(jnp.inf, dtype=kdt), x)
    return x


def _mask_tail(key, axis, start, total, sentinel):
    gidx = lax.broadcasted_iota(jnp.int32, key.shape, axis) + start
    return jnp.where(gidx < total, key, sentinel)


def _argmax_reduce(key, axis, keepdims):
    """(max, first-argmax) along `axis`. Small axes use a VPU select chain."""
    n = key.shape[axis]
    if n <= 16:
        m = lax.index_in_dim(key, 0, axis, keepdims=keepdims)
        idx = jnp.zeros(m.shape, jnp.int32)
        for r in range(1, n):
            kr = lax.index_in_dim(key, r, axis, keepdims=keepdims)
            better = kr > m                       # strict -> first occurrence
            m = jnp.where(better, kr, m)
            idx = jnp.where(better, r, idx)
        return m, idx
    m_kd = jnp.max(key, axis=axis, keepdims=True)
    ri = lax.broadcasted_iota(jnp.int32, key.shape, axis)
    cand = jnp.where(key == m_kd, ri, 2 ** 30)
    idx = jnp.min(cand, axis=axis, keepdims=keepdims)
    m = m_kd if keepdims else jnp.squeeze(m_kd, axis=axis)   # reuse, no 2nd max
    return m, idx


# --------------------------------------------------------------------------
# kernel 1: argmax over the LAST axis of (R, L)        (dim == last, dim=None)
# --------------------------------------------------------------------------
def _argmax_last(x2, budget=None):
    R, L = (int(s) for s in x2.shape)
    kdt, is_float, sent = _key_info(x2.dtype)
    itemsize = jnp.dtype(x2.dtype).itemsize
    bud, limit = _vmem_budget()
    if budget is not None:
        bud = int(budget)
    target = min(bud, 8 << 20)

    r_min = R if R <= 8 else 8
    Tl = _fit_tile(L, 128, min(8192, max(128, target // (2 * itemsize * r_min))))
    per_row = 2 * itemsize * Tl + 4 * 128 * 4     # dbl-buf input + out/scratch
    Tr = _fit_tile(R, 8, max(1, target // per_row))

    nr, nl = pl.cdiv(R, Tr), pl.cdiv(L, Tl)
    ragged = (L % Tl) != 0
    single = (nl == 1)

    def block_argmax(x_ref, l):
        key = _make_key(x_ref[...], kdt, is_float)
        if ragged:
            key = _mask_tail(key, 1, l * Tl, L, sent)
        return _argmax_reduce(key, 1, keepdims=True)          # (Tr, 1)

    if single:
        def kernel(x_ref, o_ref):
            _, i = block_argmax(x_ref, 0)
            o_ref[...] = i
        scratch = []
    else:
        def kernel(x_ref, o_ref, rm_ref, ri_ref):
            l = pl.program_id(1)
            m, i = block_argmax(x_ref, l)
            gi = i + l * Tl

            @pl.when(l == 0)
            def _():
                rm_ref[...] = m
                ri_ref[...] = gi

            @pl.when(l > 0)
            def _():
                better = m > rm_ref[...]
                ri_ref[...] = jnp.where(better, gi, ri_ref[...])
                rm_ref[...] = jnp.where(better, m, rm_ref[...])

            @pl.when(l == nl - 1)
            def _():
                o_ref[...] = ri_ref[...]
        scratch = [pltpu.VMEM((Tr, 1), kdt), pltpu.VMEM((Tr, 1), jnp.int32)]

    out = pl.pallas_call(
        kernel,
        out_shape=jax.ShapeDtypeStruct((R, 1), jnp.int32),
        grid_spec=pltpu.PrefetchScalarGridSpec(
            num_scalar_prefetch=0,
            grid=(nr, nl),
            in_specs=[pl.BlockSpec((Tr, Tl), lambda r, l: (r, l))],
            out_specs=pl.BlockSpec((Tr, 1), lambda r, l: (r, 0)),
            scratch_shapes=scratch),
        compiler_params=pltpu.CompilerParams(
            dimension_semantics=("parallel", "arbitrary"),
            vmem_limit_bytes=limit),
    )(x2)
    return out[:, 0]


# --------------------------------------------------------------------------
# kernel 2: argmax over axis 1 of (B, C, M)      (dim == second-to-last axis)
# --------------------------------------------------------------------------
def _argmax_mid3(x3, budget=None):
    B, C, M = (int(s) for s in x3.shape)
    kdt, is_float, sent = _key_info(x3.dtype)
    itemsize = jnp.dtype(x3.dtype).itemsize
    bud, limit = _vmem_budget()
    if budget is not None:
        bud = int(budget)
    target = min(bud, 8 << 20)

    To = B if B <= 8 else 8
    ti_min = _fit_tile(M, 128, 128)
    max_c = max(1, bud // (2 * itemsize * To * ti_min))
    Ct = _fit_tile(C, 8, max_c)
    per_lane = To * (2 * itemsize * Ct) + To * 128        # + padded out/scratch
    Ti = _fit_tile(M, 128, max(1, min(target // per_lane, 8192)))

    nb, nm, nc = pl.cdiv(B, To), pl.cdiv(M, Ti), pl.cdiv(C, Ct)
    ragged_c = (C % Ct) != 0
    single = (nc == 1)

    def block_argmax(x_ref, kk):
        key = _make_key(x_ref[...], kdt, is_float)            # (To, Ct, Ti)
        if ragged_c:
            key = _mask_tail(key, 1, kk * Ct, C, sent)
        return _argmax_reduce(key, 1, keepdims=True)          # (To, 1, Ti)

    if single:
        def kernel(x_ref, o_ref):
            _, i = block_argmax(x_ref, 0)
            o_ref[...] = i
        scratch = []
    else:
        def kernel(x_ref, o_ref, rm_ref, ri_ref):
            kk = pl.program_id(2)
            m, i = block_argmax(x_ref, kk)
            gi = i + kk * Ct

            @pl.when(kk == 0)
            def _():
                rm_ref[...] = m
                ri_ref[...] = gi

            @pl.when(kk > 0)
            def _():
                better = m > rm_ref[...]
                ri_ref[...] = jnp.where(better, gi, ri_ref[...])
                rm_ref[...] = jnp.where(better, m, rm_ref[...])

            @pl.when(kk == nc - 1)
            def _():
                o_ref[...] = ri_ref[...]
        scratch = [pltpu.VMEM((To, 1, Ti), kdt),
                   pltpu.VMEM((To, 1, Ti), jnp.int32)]

    out = pl.pallas_call(
        kernel,
        out_shape=jax.ShapeDtypeStruct((B, 1, M), jnp.int32),
        grid_spec=pltpu.PrefetchScalarGridSpec(
            num_scalar_prefetch=0,
            grid=(nb, nm, nc),
            in_specs=[pl.BlockSpec((To, Ct, Ti), lambda b, j, kk: (b, kk, j))],
            out_specs=pl.BlockSpec((To, 1, Ti), lambda b, j, kk: (b, 0, j)),
            scratch_shapes=scratch),
        compiler_params=pltpu.CompilerParams(
            dimension_semantics=("parallel", "parallel", "arbitrary"),
            vmem_limit_bytes=limit),
    )(x3)
    return out[:, 0, :]


# --------------------------------------------------------------------------
# kernel 3: argmax over axis d with >= 2 trailing axes, in the native layout
#           (e.g. NCHW dim=1) -- no wrapper reshape / transpose at all.
# --------------------------------------------------------------------------
def _argmax_mid_nd(x, d, budget=None):
    shape = tuple(int(s) for s in x.shape)
    lead, C, trail = shape[:d], shape[d], shape[d + 1:]
    nlead, k = len(lead), len(trail)
    t1, rest = trail[0], trail[1:]
    rest_prod = _prod(rest)
    rest_padded = _prod(rest[:-1]) * _round_up(rest[-1], 128)
    kdt, is_float, sent = _key_info(x.dtype)
    itemsize = jnp.dtype(x.dtype).itemsize
    bud, limit = _vmem_budget()
    if budget is not None:
        bud = int(budget)
    target = min(bud, 8 << 20)

    gran_t1 = 8 if k == 2 else 1      # t1 is the sublane axis only when k == 2
    t1_min = _fit_tile(t1, gran_t1, gran_t1)
    max_c = max(1, bud // (2 * itemsize * t1_min * rest_prod))
    Ct = _fit_tile(C, 1, max_c)
    per_t1 = 2 * itemsize * Ct * rest_prod + 16 * rest_padded
    Tt1 = _fit_tile(t1, gran_t1, max(1, target // per_t1))

    nt1, nc = pl.cdiv(t1, Tt1), pl.cdiv(C, Ct)
    ragged_c = (C % Ct) != 0
    single = (nc == 1)

    trail_blk = (Tt1,) + rest
    in_block = (1,) * nlead + (Ct,) + trail_blk
    out_block = (1,) * nlead + trail_blk
    comp_shape = (Ct,) + trail_blk
    grid = tuple(lead) + (nt1, nc)

    def in_map(*idx):
        lg, j, kk = idx[:nlead], idx[nlead], idx[nlead + 1]
        return (*lg, kk, j) + (0,) * (k - 1)

    def out_map(*idx):
        lg, j = idx[:nlead], idx[nlead]
        return (*lg, j) + (0,) * (k - 1)

    def block_argmax(x_ref, kk):
        key = _make_key(x_ref[...].reshape(comp_shape), kdt, is_float)
        if ragged_c:
            key = _mask_tail(key, 0, kk * Ct, C, sent)
        return _argmax_reduce(key, 0, keepdims=False)         # trail_blk shape

    if single:
        def kernel(x_ref, o_ref):
            _, i = block_argmax(x_ref, 0)
            o_ref[...] = i.reshape(out_block)
        scratch = []
    else:
        def kernel(x_ref, o_ref, rm_ref, ri_ref):
            kk = pl.program_id(nlead + 1)
            m, i = block_argmax(x_ref, kk)
            gi = i + kk * Ct

            @pl.when(kk == 0)
            def _():
                rm_ref[...] = m
                ri_ref[...] = gi

            @pl.when(kk > 0)
            def _():
                better = m > rm_ref[...]
                ri_ref[...] = jnp.where(better, gi, ri_ref[...])
                rm_ref[...] = jnp.where(better, m, rm_ref[...])

            @pl.when(kk == nc - 1)
            def _():
                o_ref[...] = ri_ref[...].reshape(out_block)
        scratch = [pltpu.VMEM(trail_blk, kdt),
                   pltpu.VMEM(trail_blk, jnp.int32)]

    out = pl.pallas_call(
        kernel,
        out_shape=jax.ShapeDtypeStruct(lead + trail, jnp.int32),
        grid_spec=pltpu.PrefetchScalarGridSpec(
            num_scalar_prefetch=0,
            grid=grid,
            in_specs=[pl.BlockSpec(in_block, in_map)],
            out_specs=pl.BlockSpec(out_block, out_map),
            scratch_shapes=scratch),
        compiler_params=pltpu.CompilerParams(
            dimension_semantics=("parallel",) * (nlead + 1) + ("arbitrary",),
            vmem_limit_bytes=limit),
    )(x)
    return out


# --------------------------------------------------------------------------
# public wrapper
# --------------------------------------------------------------------------
def pallas_argmax(x, dim=None):
    """JAX/Pallas equivalent of ArgMax(dim)(x)."""
    x = jnp.asarray(x)
    if dim is None:
        return _argmax_last(x.reshape(1, -1))[0]
    d = dim % x.ndim
    shape = x.shape
    out_shape = shape[:d] + shape[d + 1:]
    k = x.ndim - 1 - d
    if k == 0:                      # reduce over the last axis
        res = _argmax_last(x.reshape(_prod(shape[:d]), shape[d]))
        return res.reshape(out_shape)
    if k == 1:                      # reduce over the second-to-last axis
        # merging only *leading* dims keeps the TPU tiled layout intact.
        res = _argmax_mid3(x.reshape(_prod(shape[:d]), shape[d], shape[d + 1]))
        return res.reshape(out_shape)
    return _argmax_mid_nd(x, d)     # >= 2 trailing axes: fully native layout


class ArgMax:
    """Thin wrapper mirroring the nn.Module interface (no parameters)."""

    def __init__(self, dim=None):
        self.dim = dim

    def __call__(self, x):
        return pallas_argmax(x, self.dim)


if __name__ == "__main__":
    key = jax.random.PRNGKey(0)
    # NCHW segmentation-style logits: batch=2, channels=4, spatial=16x16.
    x = jax.random.normal(key, (2, 4, 16, 16), dtype=jnp.float32)

    # channel argmax (the typical use) -> native-layout N-D kernel.
    y = jax.block_until_ready(ArgMax(dim=1)(x))
    assert y.shape == (2, 16, 16) and y.dtype == jnp.int32
    assert bool(jnp.all(y == jnp.argmax(x, axis=1)))

    # dim=None path: flatten then argmax.
    y_flat = jax.block_until_ready(ArgMax(dim=None)(x))
    assert y_flat.shape == () and int(y_flat) == int(jnp.argmax(x))

    # other axes exercise the last-axis / second-to-last / leading-axis paths.
    for dim in (-1, 2, 0):
        yd = jax.block_until_ready(pallas_argmax(x, dim=dim))
        assert bool(jnp.all(yd == jnp.argmax(x, axis=dim)))

    # NaN handling matches torch.argmax (NaN treated as maximal).
    xn = jnp.array([[1.0, 3.0, 2.0], [0.5, jnp.nan, -1.0]], dtype=jnp.float32)
    yn = jax.block_until_ready(pallas_argmax(xn, dim=1))
    assert int(yn[0]) == 1 and int(yn[1]) == 1

    # Tiny VMEM-budget overrides force the tiled-reduction (accumulator) paths
    # and ragged-tail masking without needing large inputs.
    k1, k2, k3 = jax.random.split(jax.random.PRNGKey(1), 3)
    x3 = jax.random.normal(k1, (2, 37, 160), dtype=jnp.float32)
    assert bool(jnp.all(_argmax_mid3(x3, budget=8192) == jnp.argmax(x3, axis=1)))
    x2 = jax.random.normal(k2, (64, 300), dtype=jnp.float32)
    assert bool(jnp.all(_argmax_last(x2, budget=4096) == jnp.argmax(x2, axis=1)))
    x4 = jax.random.normal(k3, (2, 19, 10, 24), dtype=jnp.float32)
    assert bool(jnp.all(_argmax_mid_nd(x4, 1, budget=6000)
                        == jnp.argmax(x4, axis=1)))
    # large reduction tile (single-block vectorized path inside one block)
    x5 = jax.random.normal(k1, (2, 40, 160), dtype=jnp.float32)
    assert bool(jnp.all(_argmax_mid3(x5) == jnp.argmax(x5, axis=1)))

    print("KERNEL_OK")
</pallas_src>

<mosaic_0001>
module attributes {stable_mosaic.version = 11 : i64} {
  func.func @kernel(%arg0: i32, %arg1: i32, %arg2: i32, %arg3: memref<1x4x16x16xf32, #tpu.memory_space<vmem>>, %arg4: memref<1x16x16xi32, #tpu.memory_space<vmem>>) attributes {dimension_semantics = [#tpu.dimension_semantics<parallel>, #tpu.dimension_semantics<parallel>, #tpu.dimension_semantics<arbitrary>], iteration_bounds = array<i64: 2, 1, 1>, scalar_prefetch = 0 : i64, scratch_operands = 0 : i64, tpu.core_type = #tpu.core_type<tc>, window_params = [{transform_indices = @transform_0, window_bounds = array<i64: 1, 4, 16, 16>}, {transform_indices = @transform_1, window_bounds = array<i64: 1, 16, 16>}]} {
    %c0 = arith.constant 0 : index
    %c0_0 = arith.constant 0 : index
    %c0_1 = arith.constant 0 : index
    %c0_2 = arith.constant 0 : index
    %0 = vector.load %arg3[%c0, %c0_0, %c0_1, %c0_2] : memref<1x4x16x16xf32, #tpu.memory_space<vmem>>, vector<1x4x16x16xf32>
    %1 = vector.shape_cast %0 : vector<1x4x16x16xf32> to vector<4x16x16xf32>
    %2 = arith.cmpf one, %1, %1 : vector<4x16x16xf32>
    %cst = arith.constant 0x7F800000 : f32
    %3 = vector.broadcast %cst : f32 to vector<4x16x16xf32>
    %4 = arith.select %2, %3, %1 : vector<4x16x16xi1>, vector<4x16x16xf32>
    %5 = vector.extract_strided_slice %4 {offsets = [0, 0, 0], sizes = [1, 16, 16], strides = [1, 1, 1]} : vector<4x16x16xf32> to vector<1x16x16xf32>
    %6 = vector.shape_cast %5 : vector<1x16x16xf32> to vector<16x16xf32>
    %c0_i32 = arith.constant 0 : i32
    %7 = vector.broadcast %c0_i32 : i32 to vector<16x16xi32>
    %8 = vector.extract_strided_slice %4 {offsets = [1, 0, 0], sizes = [1, 16, 16], strides = [1, 1, 1]} : vector<4x16x16xf32> to vector<1x16x16xf32>
    %9 = vector.shape_cast %8 : vector<1x16x16xf32> to vector<16x16xf32>
    %10 = arith.cmpf ogt, %9, %6 : vector<16x16xf32>
    %11 = arith.select %10, %9, %6 : vector<16x16xi1>, vector<16x16xf32>
    %c1_i32 = arith.constant 1 : i32
    %12 = vector.broadcast %c1_i32 : i32 to vector<16x16xi32>
    %13 = arith.select %10, %12, %7 : vector<16x16xi1>, vector<16x16xi32>
    %14 = vector.extract_strided_slice %4 {offsets = [2, 0, 0], sizes = [1, 16, 16], strides = [1, 1, 1]} : vector<4x16x16xf32> to vector<1x16x16xf32>
    %15 = vector.shape_cast %14 : vector<1x16x16xf32> to vector<16x16xf32>
    %16 = arith.cmpf ogt, %15, %11 : vector<16x16xf32>
    %17 = arith.select %16, %15, %11 : vector<16x16xi1>, vector<16x16xf32>
    %c2_i32 = arith.constant 2 : i32
    %18 = vector.broadcast %c2_i32 : i32 to vector<16x16xi32>
    %19 = arith.select %16, %18, %13 : vector<16x16xi1>, vector<16x16xi32>
    %20 = vector.extract_strided_slice %4 {offsets = [3, 0, 0], sizes = [1, 16, 16], strides = [1, 1, 1]} : vector<4x16x16xf32> to vector<1x16x16xf32>
    %21 = vector.shape_cast %20 : vector<1x16x16xf32> to vector<16x16xf32>
    %22 = arith.cmpf ogt, %21, %17 : vector<16x16xf32>
    %c3_i32 = arith.constant 3 : i32
    %23 = vector.broadcast %c3_i32 : i32 to vector<16x16xi32>
    %24 = arith.select %22, %23, %19 : vector<16x16xi1>, vector<16x16xi32>
    %25 = vector.shape_cast %24 : vector<16x16xi32> to vector<1x16x16xi32>
    %c0_3 = arith.constant 0 : index
    %c0_4 = arith.constant 0 : index
    %c0_5 = arith.constant 0 : index
    %26 = vector.load %arg4[%c0_3, %c0_4, %c0_5] : memref<1x16x16xi32, #tpu.memory_space<vmem>>, vector<1x16x16xi32>
    tpu.vector_store %arg4[%c0_3, %c0_4, %c0_5], %25 {strides = array<i32>} : memref<1x16x16xi32, #tpu.memory_space<vmem>>, vector<1x16x16xi32>,
    return
  }
  func.func @transform_0(%arg0: i32, %arg1: i32, %arg2: i32) -> (i32, i32, i32, i32) {
    %c0_i32 = arith.constant 0 : i32
    %c0_i32_0 = arith.constant 0 : i32
    return %arg0, %arg2, %arg1, %c0_i32 : i32, i32, i32, i32
  }
  func.func @transform_1(%arg0: i32, %arg1: i32, %arg2: i32) -> (i32, i32, i32) {
    %c0_i32 = arith.constant 0 : i32
    %c0_i32_0 = arith.constant 0 : i32
    return %arg0, %arg1, %c0_i32 : i32, i32, i32
  }
}

</mosaic_0001>

<bundles_post_ra>
// kernel: tpu_custom_call.1
= control target key start
LH: loop header
LB: loop body
LE: loop exit
PB: predicated region body
PF: predicated region fallthrough
CT: control target
= control target key end

     0   :  { %6 = vsyncpa [#allocation3], 0  ;;  %s711_s0 = inlined_call_operand.hbm [shape: f32[2,4,16,16], index: 0, kind: input, shape index: {}]   ;;  %s712_s1 = inlined_call_operand.hbm [shape: s32[2,16,16], index: 1, kind: output, shape index: {}]  }
   0x1   :  { %8 = vsyncpa [#allocation3 + $0x1], 0 }
   0x2   :  { %9 = vsyncpa [#allocation4], 0 }
   0x3   :  { %11 = vsyncpa [#allocation4 + $0x1], 0  ;;  %s531_s6 = smov 0   ;;  %s533_s7 = smov 0  }
   0x4   :  { %s535_s8 = smov 0   ;;  %s537_s9 = smov 0  }
   0x5   :  { %s539_s10 = smov 0   ;;  %s541_s11 = smov 0  }
   0x6 LB: > { %s316_s12 = sadd.s32 4294967295, %s512_s11   ;;  %s317_s13 = sadd.s32 4294967294, %s512_s11   ;;  %s512_s11 = sphi %s541_s11, %s17_s11   ;;  %s508_s10 = sphi %s539_s10, %s727_s10   ;;  %s504_s9 = sphi %s537_s9, %s726_s9   ;;  %s500_s8 = sphi %s535_s8, %s725_s8   ;;  %s496_s7 = sphi %s533_s7, %s724_s7   ;;  %s492_s6 = sphi %s531_s6, %s723_s6  }
   0x7   : > { %s36_s14 = sadd.s32 1, %s508_s10  ;;  %s47_s15 = sadd.s32 1, %s500_s8 }
   0x8   : > { %p38_p0 = scmp.ge.s32.totalorder %s36_s14, 2  ;;  %p54_p1 = scmp.ne.s32.totalorder %s500_s8, %s496_s7 }
   0x9   : > { %p55_p2 = scmp.eq.s32.totalorder %s512_s11, 0  ;;  %p60_p3 = scmp.ne.s32.totalorder %s496_s7, %s492_s6 }
   0xa   : > { %s729_s14 = smov (%p38_p0, %s36_s14), 0  ;;  %p61_p5 = scmp.eq.s32.totalorder %s316_s12, 0 }
   0xb   : > { %p572_p4 = por %p55_p2, %p54_p1  ;;  %s40_s17 = ssub.s32 %s508_s10, %s729_s14 }
   0xc   : > { %p86_p6 = scmp.eq.s32.totalorder %s316_s12, 1  ;;  %p45_p7 = scmp.eq.s32.totalorder %s40_s17, 0 }
   0xd   : > { %p578_p8 = por %p61_p5, %p60_p3  ;;  %p92_p10 = scmp.eq.s32.totalorder %s317_s13, 1 }
   0xe   : > { %p582_p9 = por %p86_p6, %p54_p1  ;;  %p345_p13 = scmp.lt.s32.totalorder %s512_s11, 2 }
   0xf   : > { %s587_s20 = scalar_select %p45_p7, %s500_s8, %s47_s15  }
  0x10   : > { %s716_s19 = scalar_select %p582_p9, 1, 0 }
  0x11   : > { %p589_p11 = por %p92_p10, %p60_p3  ;;  %s112_s22 = sand.u32 1, %s500_s8  }
  0x12   : > { %s320_s23 = sshll.u32 %s112_s22, 6  ;;  %s331_s24 = sshll.u32 %s508_s10, 10 }
  0x13   : > { %s717_s21 = scalar_select %p589_p11, 1, 0 }
  0x14   : > { %s600_s27 = scalar_lea.hbm %s711_s0, %s331_s24  ;;  %s116_s28 = scalar_lea.vmem [#allocation2], %s320_s23 }
  0x15   : > { %s128_s29 = sshll.u32 %s116_s28, 4  ;;  %p606_p0 = pnand %p345_p13, %p572_p4  ;;  %s602_s29 = int_to_ptr.vmem [resolvable:$true] %s128_s29 }
  0x16   : > { %s611_s2 = scalar_lea.sflag [#allocation3], %s112_s22  ;;  %s400_s3 = scalar_lea.hbm %s600_s27, 1024 }
  0x17   : > { %p401_p2 = scmp.ne.s32.totalorder %s600_s27, %s400_s3  ;;  %p402_p3 = pneg %p606_p0 }
  0x18   : > { %s405_s12 = scalar_lea.hbm %s711_s0, 2048  ;;  %p406_p4 = scmp.lt.u32.totalorder %s600_s27, %s711_s0 }
  0x19   : > { %p403_p5 = pnand %p402_p3, %p401_p2  ;;  %p407_p7 = scmp.lt.u32.totalorder %s405_s12, %s400_s3 }
  0x1a   : > { %p409_p13 = scmp.lt.u32.totalorder %s400_s3, %s600_s27 }
  0x1b   : > { %p404_p6 = pneg %p403_p5  ;;  %p408_p10 = por %p407_p7, %p406_p4 }
  0x1d   : > { %p410_p12 = por %p409_p13, %p408_p10 }
  0x1f   : > { %p411_p1 = pnand %p410_p12, %p404_p6 }
  0x21   : > { %414 = shalt.err (!%p411_p1)
}
  0x22   : > { %s415_s16 = scalar_lea.vmem %s602_s29, 1024  ;;  %s514_s17 = smov [#allocation2]  }
  0x23   : > { %p416_p2 = scmp.ne.s32.totalorder %s602_s29, %s415_s16  ;;  %s420_s22 = sshll.u32 %s514_s17, 4  ;;  %s421_s22 = int_to_ptr.vmem [resolvable:$false] %s420_s22 }
  0x24   : > { %s422_s23 = scalar_lea.vmem %s421_s22, 2048  ;;  %p423_p9 = scmp.lt.s32.totalorder %s602_s29, %s421_s22 }
  0x25   : > { %p418_p5 = pnand %p416_p2, %p402_p3  ;;  %p424_p4 = scmp.lt.s32.totalorder %s422_s23, %s415_s16 }
  0x27   : > { %p419_p11 = pneg %p418_p5  ;;  %p425_p7 = por %p424_p4, %p423_p9 }
  0x29   : > { %p426_p10 = pnand %p425_p7, %p419_p11 }
  0x2b   : > { %429 = shalt.err (!%p426_p10)
}
  0x2c   : > { %s515_s24 = smov 128   ;;  %s516_s25 = smov 8  }
  0x2d   : > { %340 = dma.hbm_to_vmem [thread:$0]  (!%p606_p0), %s600_s27, 1024, %s602_s29, %s611_s2, %s515_s24, %s515_s24, %s516_s25  }
  0x2e   : > { %p136_p12 = scmp.lt.s32.totalorder %s512_s11, 3  ;;  %p719_p1 = scmp.ge.s32.totalorder %s512_s11, 1 }
  0x30   : > { %p137_p3 = pnand %p719_p1, %p136_p12 }
  0x31   : > { %s643_s26 = sand.u32 (!%p137_p3), 1, %s496_s7  }
  0x32   : > { %140 = sbr.rel (%p137_p3) target bundleno = 86 (0x56), region = 24  ;;  %s324_s28 = sshll.u32 (!%p137_p3), %s643_s26, 6 }
  0x33   : > { %s143_s3 = scalar_lea.sflag (!%p137_p3), [#allocation3], %s643_s26  ;;  %s146_s4 = scalar_lea.vmem (!%p137_p3), [#allocation2], %s324_s28 }
  0x39   : > { %483 = dma.done.wait (%p578_p8), %s143_s3, 1024  }
  0x3a   : > { %485 = vsyncadd (%p578_p8), %s143_s3, 4294966272  ;;  %s325_s27 = sshll.u32 %s643_s26, 4  ;;  %v168_v0 = vld [vmem:[%s146_s4] sm:$0xff]  ;;  %v170_v1 = vld [vmem:[%s146_s4 + $0x10] sm:$0xff]  ;;  %v517_v13 = vmov 0   ;;  %vm208_vm10 = vcmask 130048  }
  0x3b   : > { %v172_v2 = vld [vmem:[%s146_s4 + $0x20] sm:$0xff]  ;;  %v174_v3 = vld [vmem:[%s146_s4 + $0x30] sm:$0xff]  ;;  %vm176_vm0 = vcmp.ne.f32.partialorder %v168_v0, %v168_v0  ;;  %vm178_vm1 = vcmp.ne.f32.partialorder %v170_v1, %v170_v1  ;;  %v169_v4 = vld [vmem:[%s146_s4 + $0x8] sm:$0xff]  ;;  %s164_s18 = scalar_lea.vmem [#allocation5], %s325_s27  ;;  %s332_s30 = sshll.u32 %s504_s9, 8 }
  0x3c   : > { %vm180_vm2 = vcmp.ne.f32.partialorder %v172_v2, %v172_v2  ;;  %v171_v5 = vld [vmem:[%s146_s4 + $0x18] sm:$0xff]  ;;  %vm182_vm3 = vcmp.ne.f32.partialorder %v174_v3, %v174_v3  ;;  %v184_v6 = vsel %vm176_vm0, inf, %v168_v0  ;;  %v186_v7 = vsel %vm178_vm1, inf, %v170_v1  ;;  %v173_v9 = vld [vmem:[%s146_s4 + $0x28] sm:$0xff]  ;;  %s227_s29 = sshll.u32 %s164_s18, 4  ;;  %s661_s9 = scalar_lea.hbm %s712_s1, %s332_s30  ;;  %s656_s29 = int_to_ptr.vmem [resolvable:$true] %s227_s29 }
  0x3d   : > { %v188_v8 = vsel %vm180_vm2, inf, %v172_v2  ;;  %v175_v10 = vld [vmem:[%s146_s4 + $0x38] sm:$0xff]  ;;  %v190_v11 = vsel %vm182_vm3, inf, %v174_v3  ;;  %vm192_vm4 = vcmp.gt.f32.partialorder %v186_v7, %v184_v6  ;;  %vm177_vm5 = vcmp.ne.f32.partialorder %v169_v4, %v169_v4  ;;  %s212_s12 = scalar_lea.sflag [#allocation4], %s643_s26  ;;  %s430_s13 = scalar_lea.vmem %s656_s29, 256 }
  0x3e   : > { %vm179_vm6 = vcmp.ne.f32.partialorder %v171_v5, %v171_v5  ;;  %v194_v12 = vsel %vm192_vm4, %v186_v7, %v184_v6  ;;  %v196_v14 = vsel %vm192_vm4, 1, %v517_v13  ;;  %vm181_vm7 = vcmp.ne.f32.partialorder %v173_v9, %v173_v9  ;;  %p431_p8 = scmp.ne.s32.totalorder %s656_s29, %s430_s13  ;;  %p720_p9 = scmp.ne.s32.totalorder %s716_s19, 0 }
  0x3f   : > { %vm183_vm8 = vcmp.ne.f32.partialorder %v175_v10, %v175_v10  ;;  %vm198_vm9 = vcmp.gt.f32.partialorder %v188_v8, %v194_v12  ;;  %v185_v15 = vsel %vm177_vm5, inf, %v169_v4  ;;  %v187_v16 = vsel %vm179_vm6, inf, %v171_v5  ;;  %s518_s15 = smov [#allocation5]  }
  0x40   : > { %v189_v17 = vsel %vm181_vm7, inf, %v173_v9  ;;  %v200_v18 = vsel %vm198_vm9, %v188_v8, %v194_v12  ;;  %v202_v19 = vsel %vm198_vm9, 2, %v196_v14  ;;  %vm193_vm11 = vcmp.gt.f32.partialorder %v187_v16, %v185_v15  ;;  %p432_p11 = pnand %p431_p8, %p720_p9  ;;  %s434_s16 = sshll.u32 %s518_s15, 4  ;;  %s435_s16 = int_to_ptr.vmem [resolvable:$false] %s434_s16 }
  0x41   : > { %vm204_vm12 = vcmp.gt.f32.partialorder %v190_v11, %v200_v18  ;;  %v191_v20 = vsel %vm183_vm8, inf, %v175_v10  ;;  %v195_v21 = vsel %vm193_vm11, %v187_v16, %v185_v15  ;;  %v197_v22 = vsel %vm193_vm11, 1, %v517_v13  ;;  %s436_s17 = scalar_lea.vmem %s435_s16, 512  ;;  %p437_p6 = scmp.lt.s32.totalorder %s656_s29, %s435_s16 }
  0x42   : > { %v206_v23 = vsel %vm204_vm12, 3, %v202_v19  ;;  %vm199_vm13 = vcmp.gt.f32.partialorder %v189_v17, %v195_v21  ;;  %p433_p0 = pneg %p432_p11  ;;  %p438_p13 = scmp.lt.s32.totalorder %s436_s17, %s430_s13 }
  0x43   : > { %209 = vst.msk [vmem:[%s164_s18] sm:$0xff] %vm208_vm10, %v206_v23  ;;  %v201_v24 = vsel %vm199_vm13, %v189_v17, %v195_v21  ;;  %v203_v25 = vsel %vm199_vm13, 2, %v197_v22 }
  0x44   : > { %vm205_vm14 = vcmp.gt.f32.partialorder %v191_v20, %v201_v24  ;;  %p439_p2 = por %p438_p13, %p437_p6 }
  0x45   : > { %v207_v26 = vsel %vm205_vm14, 3, %v203_v25 }
  0x46   : > { %210 = vst.msk [vmem:[%s164_s18 + $0x8] sm:$0xff] %vm208_vm10, %v207_v26  ;;  %p440_p5 = pnand %p439_p2, %p433_p0 }
  0x48   : > { %443 = shalt.err (!%p440_p5)
}
  0x49   : > { %s444_s22 = scalar_lea.hbm %s661_s9, 256  ;;  %s448_s25 = scalar_lea.hbm %s712_s1, 512 }
  0x4a   : > { %p445_p4 = scmp.ne.s32.totalorder %s661_s9, %s444_s22  ;;  %p449_p12 = scmp.lt.u32.totalorder %s661_s9, %s712_s1 }
  0x4b   : > { %p450_p1 = scmp.lt.u32.totalorder %s448_s25, %s444_s22  ;;  %p452_p8 = scmp.lt.u32.totalorder %s444_s22, %s661_s9 }
  0x4c   : > { %p446_p7 = pnand %p445_p4, %p720_p9 }
  0x4d   : > { %p451_p3 = por %p450_p1, %p449_p12 }
  0x4e   : > { %p447_p10 = pneg %p446_p7 }
  0x4f   : > { %p453_p11 = por %p452_p8, %p451_p3 }
  0x51   : > { %p454_p0 = pnand %p453_p11, %p447_p10 }
  0x53   : > { %457 = shalt.err (!%p454_p0)
}
  0x54   : > { %s519_s4 = smov 128   ;;  %s520_s27 = smov 8  }
  0x55   : > { %335 = dma.vmem_to_hbm [thread:$0]  (%p720_p9), %s656_s29, 256, %s661_s9, %s212_s12, %s519_s4, %s519_s4, %s520_s27  }
  0x56 PF: > { %s242_s18 = sand.u32 1, %s492_s6   ;;  %p721_p6 = scmp.ne.s32.totalorder %s717_s21, 0 }
  0x57   : > { %p722_p13 = scmp.ge.s32.totalorder %s512_s11, 2  ;;  %s243_s30 = scalar_lea.sflag [#allocation4], %s242_s18 }
  0x59   : > { %p342_p2 = pnand %p722_p13, %p721_p6 }
  0x5b   : > { %487 = dma.done.wait (!%p342_p2), %s243_s30, 256  }
  0x5c   : > { %489 = vsyncadd (!%p342_p2), %s243_s30, 4294967040  ;;  %s17_s11 = sadd.s32 1, %s512_s11   ;;  %s723_s6 = smov %s496_s7 }
  0x5d   : > { %p14_p5 = scmp.ge.s32.totalorder %s17_s11, 4   ;;  %s724_s7 = smov %s500_s8 }
  0x5e   : > { %s725_s8 = smov %s587_s20  ;;  %s726_s9 = smov %s508_s10 }
  0x5f   : > { %s727_s10 = smov %s729_s14  ;;  %16 = sbr.rel (!%p14_p5) target bundleno = 6 (0x6), region = 69 }
  0x66   :  { %248 = vsyncpa [#allocation3], 1 }
  0x67   :  { %250 = vsyncpa [#allocation3 + $0x1], 1 }
  0x68   :  { %251 = vsyncpa [#allocation4], 1 }
  0x69   :  { %253 = vsyncpa [#allocation4 + $0x1], 1 }

</bundles_post_ra>
